<compile_context>
chip_gen: v7x
topology: tpu7x:2x2x1
jax: 0.10.0
libtpu: 0.0.40
codegen_flags: <defaults>
</compile_context>

<pallas_src>
import functools

import jax
import jax.numpy as jnp
from jax.experimental import pallas as pl
from jax.experimental.pallas import tpu as pltpu

IGNORE_INDEX = -1
_LANE = 128


def _vmem_capacity_bytes():
    """Physical VMEM of the current TPU generation (conservative fallback)."""
    try:
        info = pltpu.get_tpu_info()
        cap = getattr(info, "vmem_capacity_bytes", None)
        if cap:
            return int(cap)
    except Exception:
        pass
    return 64 * 1024 * 1024  # assume v7x-sized VMEM if we cannot query


def _budgets():
    """(logits block byte budget, vmem_limit_bytes) per TPU generation."""
    cap = _vmem_capacity_bytes()
    if cap >= 100 * 1024 * 1024:                 # v5e / v6e: 128 MiB physical
        return 4 * 1024 * 1024, 64 * 1024 * 1024
    # v7x (64 MiB per TC) or unknown: smaller blocks, tighter scoped limit.
    return (5 * 1024 * 1024) // 2, 40 * 1024 * 1024


def _choose_tile(hw, num_class, itemsize, block_budget, vmem_limit):
    """Pick the HW tile: a multiple of 128 (or the full HW extent), sized by
    bytes so per-grid-step overhead (~0.35 us) is amortized on every dtype."""
    c_pad = -(-num_class // 8) * 8               # sublane-padded channel count
    # Cap 1: logits HBM bytes per block.
    t_block = block_budget // max(1, num_class * itemsize)
    # Cap 2: in-VMEM working set per pixel column: ~5 live (C_pad, T) f32
    # temporaries + double-buffered logits block + double-buffered i32 labels.
    per_px = 5 * c_pad * 4 + 2 * c_pad * itemsize + 2 * 4
    t_vmem = int(vmem_limit * 0.6) // per_px
    t = min(t_block, t_vmem)
    t = max(_LANE, (t // _LANE) * _LANE)
    if hw <= t:
        return hw                                # single tile: full-dim block
    # Prefer a 128-multiple that divides HW exactly, so NO step pays the
    # padding mask (only search down to half the budget).
    for cand in range(t, t // 2, -_LANE):
        if hw % cand == 0:
            return cand
    return t                                     # partial last tile, gated


def _soft_dice_kernel(x_ref, t_ref, num_ref, den_ref, num_acc, den_acc, *,
                      num_class, hw, tile, splits, tiles_per_split):
    # x_ref:    (1, C, T)  logits tile (native dtype, upcast below)
    # t_ref:    (1, 1, T)  integer labels tile
    # num_ref:  (1, C, 1)  per-(batch, split) numerator partial (sum p*tt)
    # den_ref:  (1, C, 1)  per-(batch, split) denominator partial (sum p + tt)
    # num_acc / den_acc: (C, 1) f32 running sums, resident across the k axis.
    k = pl.program_id(1)

    @pl.when(k == 0)
    def _init():
        num_acc[...] = jnp.zeros_like(num_acc)
        den_acc[...] = jnp.zeros_like(den_acc)

    x = x_ref[0].astype(jnp.float32)             # (C, T)
    labels = t_ref[0].astype(jnp.int32)          # (1, T)
    cls = jax.lax.broadcasted_iota(jnp.int32, (num_class, 1), 0)   # (C, 1)

    def _accumulate(valid):
        # valid: None (all pixels in-range) or (1, T) bool padding mask.
        if valid is None:
            keep = labels != IGNORE_INDEX
            xm = x
        else:
            keep = jnp.logical_and(valid, labels != IGNORE_INDEX)
            xm = jnp.where(valid, x, 0.0)        # keep exp() finite on padding
        keep_f = keep.astype(jnp.float32)        # (1, T)

        # Softmax over the channel (sublane) axis.  The ignore/padding mask is
        # folded into the 1/sum broadcast scale (no extra (C,T) masking mul).
        # Approx reciprocal on the EUP + one Newton step restores f32 accuracy.
        m = jnp.max(xm, axis=0, keepdims=True)   # (1, T)
        e = jnp.exp(xm - m)                      # (C, T)
        s = jnp.sum(e, axis=0, keepdims=True)    # (1, T)
        inv = pl.reciprocal(s, approx=True)
        inv = inv * (2.0 - s * inv)              # Newton refinement
        p = e * (keep_f * inv)                   # (C, T) masked softmax

        # One-hot target as a boolean compare; ignored (-1) pixels never match
        # a class in [0, C).  Padding columns carry undefined label bytes, so
        # AND with `valid` when present (matches the scatter-then-drop ref).
        onehot = labels == cls                   # (C, T) bool
        if valid is not None:
            onehot = jnp.logical_and(onehot, valid)

        num_acc[...] += jnp.sum(jnp.where(onehot, p, 0.0),
                                axis=1, keepdims=True)            # (C, 1)
        den_acc[...] += (jnp.sum(p, axis=1, keepdims=True)
                         + jnp.sum(jnp.where(onehot, 1.0, 0.0),
                                   axis=1, keepdims=True))        # (C, 1)

    total_tiles = -(-hw // tile)                 # static (trace-time) ints
    partial_tile = (hw % tile) != 0
    if partial_tile:
        # Only the single tile that crosses the image boundary needs the pad
        # mask; gate it so every other step runs the lean path.
        i = pl.program_id(0)
        s_idx = (i % splits) if splits > 1 else 0
        global_k = s_idx * tiles_per_split + k
        is_boundary = global_k == total_tiles - 1

        @pl.when(is_boundary)
        def _masked():
            pix = (global_k * tile
                   + jax.lax.broadcasted_iota(jnp.int32, (1, tile), 1))
            _accumulate(pix < hw)

        @pl.when(jnp.logical_not(is_boundary))
        def _full():
            _accumulate(None)
    else:
        _accumulate(None)

    @pl.when(k == tiles_per_split - 1)
    def _finalize():
        num_ref[0] = num_acc[...]
        den_ref[0] = den_acc[...]


def soft_dice_loss(logits, target, *, epsilon=1e-07, tile=None, hw_splits=None):
    """logits: (N, C, H, W) float32/bfloat16; target: (N, H, W) ints (-1 = ignore)."""
    N, C, H, W = logits.shape
    HW = H * W

    block_budget, vmem_limit = _budgets()

    # No dtype casts in the wrapper (they are extra HBM passes): logits and
    # labels both go through the BlockSpec in their native dtype.  Only guard
    # against >32-bit label dtypes, which Mosaic cannot load.
    x = logits.reshape(N, C, HW)
    if jnp.dtype(target.dtype).itemsize > 4:
        target = target.astype(jnp.int32)
    t = target.reshape(N, 1, HW)

    if tile is None:
        tile = _choose_tile(HW, C, jnp.dtype(logits.dtype).itemsize,
                            block_budget, vmem_limit)
    assert tile == HW or tile % _LANE == 0, "HW tile must be full or 128-aligned"

    total_tiles = -(-HW // tile)
    if hw_splits is None:
        # Keep both TensorCores busy when N == 1 (megacore only shards the
        # "parallel" axis); split HW at a tile boundary when it divides evenly.
        hw_splits = 2 if (N == 1 and total_tiles >= 2 and total_tiles % 2 == 0) else 1
    S = max(1, int(hw_splits))
    assert total_tiles % S == 0, "hw_splits must divide the number of HW tiles"
    tiles_per_split = total_tiles // S

    if S == 1:
        x_map = lambda i, k: (i, 0, k)
        t_map = lambda i, k: (i, 0, k)
        o_map = lambda i, k: (i, 0, 0)
    else:
        x_map = lambda i, k: (i // S, 0, (i % S) * tiles_per_split + k)
        t_map = lambda i, k: (i // S, 0, (i % S) * tiles_per_split + k)
        o_map = lambda i, k: (i, 0, 0)

    kernel = functools.partial(_soft_dice_kernel, num_class=C, hw=HW,
                               tile=tile, splits=S,
                               tiles_per_split=tiles_per_split)

    num, den = pl.pallas_call(
        kernel,
        out_shape=(jax.ShapeDtypeStruct((N * S, C, 1), jnp.float32),
                   jax.ShapeDtypeStruct((N * S, C, 1), jnp.float32)),
        grid=(N * S, tiles_per_split),
        in_specs=[
            pl.BlockSpec((1, C, tile), x_map),
            pl.BlockSpec((1, 1, tile), t_map),
        ],
        # Output blocks stay resident across the HW (k) axis; written once at
        # the last k of each (batch, split).
        out_specs=(pl.BlockSpec((1, C, 1), o_map),
                   pl.BlockSpec((1, C, 1), o_map)),
        scratch_shapes=[
            pltpu.VMEM((C, 1), jnp.float32),   # numerator accumulator
            pltpu.VMEM((C, 1), jnp.float32),   # denominator accumulator
        ],
        compiler_params=pltpu.CompilerParams(
            dimension_semantics=("parallel", "arbitrary"),
            vmem_limit_bytes=vmem_limit,
        ),
    )(x, t)

    # Final reduction over the tiny (N, S, C) partials is glue.
    num = num.reshape(N, S, C).sum(axis=1)
    den = den.reshape(N, S, C).sum(axis=1)
    dice = (2.0 * num) / (den + epsilon)
    return 1.0 - jnp.mean(dice)


def _reference_soft_dice_loss(logits, target, epsilon=1e-07):
    # Pure-JAX re-statement of the PyTorch forward, for verification.
    N, C, H, W = logits.shape
    mask = (target != IGNORE_INDEX).astype(jnp.float32)[:, None, :, :]
    p = jax.nn.softmax(logits.astype(jnp.float32), axis=1) * mask
    tt = jax.nn.one_hot(target + 1, C + 1, axis=1, dtype=jnp.float32)[:, 1:, :, :]
    num = 2.0 * jnp.sum(p * tt, axis=(2, 3))
    den = jnp.sum(p + tt, axis=(2, 3))
    dice = num / (den + epsilon)
    return 1.0 - jnp.mean(dice)


if __name__ == "__main__":
    key = jax.random.PRNGKey(0)
    k1, k2, k3, k4, k5, k6 = jax.random.split(key, 6)

    # --- check 1: small f32 case (single HW tile) --------------------------
    N, C, H, W = 2, 4, 16, 16
    logits = jax.random.normal(k1, (N, C, H, W), dtype=jnp.float32)
    target = jax.random.randint(k2, (N, H, W), minval=-1, maxval=C,
                                dtype=jnp.int32)
    loss = jax.block_until_ready(soft_dice_loss(logits, target))
    ref = jax.block_until_ready(_reference_soft_dice_loss(logits, target))
    assert jnp.allclose(loss, ref, atol=1e-5, rtol=1e-5), (loss, ref)

    # --- check 2: multi-tile accumulation with a gated partial last tile ---
    H2, W2 = 18, 18                       # HW = 324 -> tiles 128 / 128 / 68
    logits2 = jax.random.normal(k3, (N, C, H2, W2), dtype=jnp.float32)
    target2 = jax.random.randint(k4, (N, H2, W2), minval=-1, maxval=C,
                                 dtype=jnp.int32)
    loss2 = jax.block_until_ready(soft_dice_loss(logits2, target2, tile=128))
    ref2 = jax.block_until_ready(_reference_soft_dice_loss(logits2, target2))
    assert jnp.allclose(loss2, ref2, atol=1e-5, rtol=1e-5), (loss2, ref2)

    # --- check 3: bf16 logits passed through and upcast in-kernel ----------
    logits_bf16 = logits.astype(jnp.bfloat16)
    loss3 = jax.block_until_ready(soft_dice_loss(logits_bf16, target))
    ref3 = jax.block_until_ready(
        _reference_soft_dice_loss(logits_bf16.astype(jnp.float32), target))
    assert jnp.allclose(loss3, ref3, atol=1e-5, rtol=1e-5), (loss3, ref3)

    # --- check 4: N=1 megacore HW split (S=2) + gated partial last tile ----
    H4, W4 = 30, 30                       # HW = 900 -> 8 tiles of 128 (last=4px)
    logits4 = jax.random.normal(k5, (1, C, H4, W4), dtype=jnp.float32)
    target4 = jax.random.randint(k6, (1, H4, W4), minval=-1, maxval=C,
                                 dtype=jnp.int32)
    loss4 = jax.block_until_ready(soft_dice_loss(logits4, target4, tile=128))
    ref4 = jax.block_until_ready(_reference_soft_dice_loss(logits4, target4))
    assert jnp.allclose(loss4, ref4, atol=1e-5, rtol=1e-5), (loss4, ref4)

    print("KERNEL_OK")
</pallas_src>

<mosaic_0001>
module attributes {stable_mosaic.version = 11 : i64} {
  func.func @_soft_dice_kernel(%arg0: i32, %arg1: i32, %arg2: memref<1x4x256xf32, #tpu.memory_space<vmem>>, %arg3: memref<1x1x256xi32, #tpu.memory_space<vmem>>, %arg4: memref<1x4x1xf32, #tpu.memory_space<vmem>>, %arg5: memref<1x4x1xf32, #tpu.memory_space<vmem>>, %arg6: memref<4x1xf32, #tpu.memory_space<vmem>>, %arg7: memref<4x1xf32, #tpu.memory_space<vmem>>) attributes {dimension_semantics = [#tpu.dimension_semantics<parallel>, #tpu.dimension_semantics<arbitrary>], iteration_bounds = array<i64: 2, 1>, scalar_prefetch = 0 : i64, scratch_operands = 2 : i64, tpu.core_type = #tpu.core_type<tc>, window_params = [{transform_indices = @transform_0, window_bounds = array<i64: 1, 4, 256>}, {transform_indices = @transform_1, window_bounds = array<i64: 1, 1, 256>}, {transform_indices = @transform_2, window_bounds = array<i64: 1, 4, 1>}, {transform_indices = @transform_3, window_bounds = array<i64: 1, 4, 1>}]} {
    %c0_i32 = arith.constant 0 : i32
    %0 = arith.cmpi eq, %arg1, %c0_i32 : i32
    %1 = arith.extui %0 : i1 to i32
    %c0_i32_0 = arith.constant 0 : i32
    %2 = arith.cmpi ne, %1, %c0_i32_0 : i32
    scf.if %2 {
      %cst_24 = arith.constant 0.000000e+00 : f32
      %51 = vector.broadcast %cst_24 : f32 to vector<4x1xf32>
      %c0_25 = arith.constant 0 : index
      %c0_26 = arith.constant 0 : index
      %52 = vector.load %arg6[%c0_25, %c0_26] : memref<4x1xf32, #tpu.memory_space<vmem>>, vector<4x1xf32>
      tpu.vector_store %arg6[%c0_25, %c0_26], %51 {strides = array<i32>} : memref<4x1xf32, #tpu.memory_space<vmem>>, vector<4x1xf32>,
      %cst_27 = arith.constant 0.000000e+00 : f32
      %53 = vector.broadcast %cst_27 : f32 to vector<4x1xf32>
      %c0_28 = arith.constant 0 : index
      %c0_29 = arith.constant 0 : index
      %54 = vector.load %arg7[%c0_28, %c0_29] : memref<4x1xf32, #tpu.memory_space<vmem>>, vector<4x1xf32>
      tpu.vector_store %arg7[%c0_28, %c0_29], %53 {strides = array<i32>} : memref<4x1xf32, #tpu.memory_space<vmem>>, vector<4x1xf32>,
    } else {
    }
    %c0 = arith.constant 0 : index
    %c0_1 = arith.constant 0 : index
    %c0_2 = arith.constant 0 : index
    %3 = vector.load %arg2[%c0, %c0_1, %c0_2] : memref<1x4x256xf32, #tpu.memory_space<vmem>>, vector<1x4x256xf32>
    %4 = vector.shape_cast %3 : vector<1x4x256xf32> to vector<4x256xf32>
    %c0_3 = arith.constant 0 : index
    %c0_4 = arith.constant 0 : index
    %c0_5 = arith.constant 0 : index
    %5 = vector.load %arg3[%c0_3, %c0_4, %c0_5] : memref<1x1x256xi32, #tpu.memory_space<vmem>>, vector<1x1x256xi32>
    %6 = vector.shape_cast %5 : vector<1x1x256xi32> to vector<1x256xi32>
    %7 = tpu.iota {dimensions = array<i32: 0>} : vector<4x1xi32>
    %c-1_i32 = arith.constant -1 : i32
    %8 = vector.broadcast %c-1_i32 : i32 to vector<1x256xi32>
    %9 = arith.cmpi ne, %6, %8 : vector<1x256xi32>
    %10 = arith.extui %9 : vector<1x256xi1> to vector<1x256xi32>
    %11 = arith.sitofp %10 : vector<1x256xi32> to vector<1x256xf32>
    %cst = arith.constant dense<0xFF800000> : vector<256xf32>
    %12 = vector.multi_reduction <maximumf>, %4, %cst [0] : vector<4x256xf32> to vector<256xf32>
    %13 = vector.shape_cast %12 : vector<256xf32> to vector<1x256xf32>
    %14 = vector.broadcast %13 : vector<1x256xf32> to vector<4x256xf32>
    %15 = arith.subf %4, %14 : vector<4x256xf32>
    %16 = math.exp %15 : vector<4x256xf32>
    %cst_6 = arith.constant dense<0.000000e+00> : vector<256xf32>
    %17 = vector.multi_reduction <add>, %16, %cst_6 [0] : vector<4x256xf32> to vector<256xf32>
    %18 = vector.shape_cast %17 : vector<256xf32> to vector<1x256xf32>
    %19 = tpu.reciprocal %18 {approx = true} : vector<1x256xf32> -> vector<1x256xf32>
    %20 = arith.mulf %18, %19 : vector<1x256xf32>
    %cst_7 = arith.constant 2.000000e+00 : f32
    %21 = vector.broadcast %cst_7 : f32 to vector<1x256xf32>
    %22 = arith.subf %21, %20 : vector<1x256xf32>
    %23 = arith.mulf %19, %22 : vector<1x256xf32>
    %24 = arith.mulf %11, %23 : vector<1x256xf32>
    %25 = vector.broadcast %24 : vector<1x256xf32> to vector<4x256xf32>
    %26 = arith.mulf %16, %25 : vector<4x256xf32>
    %27 = vector.broadcast %6 : vector<1x256xi32> to vector<4x256xi32>
    %28 = vector.broadcast %7 : vector<4x1xi32> to vector<4x256xi32>
    %29 = arith.cmpi eq, %27, %28 : vector<4x256xi32>
    %c0_8 = arith.constant 0 : index
    %c0_9 = arith.constant 0 : index
    %30 = vector.load %arg6[%c0_8, %c0_9] : memref<4x1xf32, #tpu.memory_space<vmem>>, vector<4x1xf32>
    %cst_10 = arith.constant 0.000000e+00 : f32
    %31 = vector.broadcast %cst_10 : f32 to vector<4x256xf32>
    %32 = arith.select %29, %26, %31 : vector<4x256xi1>, vector<4x256xf32>
    %cst_11 = arith.constant dense<0.000000e+00> : vector<4xf32>
    %33 = vector.multi_reduction <add>, %32, %cst_11 [1] : vector<4x256xf32> to vector<4xf32>
    %34 = vector.shape_cast %33 : vector<4xf32> to vector<4x1xf32>
    %35 = arith.addf %30, %34 : vector<4x1xf32>
    %c0_12 = arith.constant 0 : index
    %c0_13 = arith.constant 0 : index
    %36 = vector.load %arg6[%c0_12, %c0_13] : memref<4x1xf32, #tpu.memory_space<vmem>>, vector<4x1xf32>
    tpu.vector_store %arg6[%c0_12, %c0_13], %35 {strides = array<i32>} : memref<4x1xf32, #tpu.memory_space<vmem>>, vector<4x1xf32>,
    %c0_14 = arith.constant 0 : index
    %c0_15 = arith.constant 0 : index
    %37 = vector.load %arg7[%c0_14, %c0_15] : memref<4x1xf32, #tpu.memory_space<vmem>>, vector<4x1xf32>
    %cst_16 = arith.constant dense<0.000000e+00> : vector<4xf32>
    %38 = vector.multi_reduction <add>, %26, %cst_16 [1] : vector<4x256xf32> to vector<4xf32>
    %39 = vector.shape_cast %38 : vector<4xf32> to vector<4x1xf32>
    %cst_17 = arith.constant 1.000000e+00 : f32
    %cst_18 = arith.constant 0.000000e+00 : f32
    %40 = vector.broadcast %cst_17 : f32 to vector<4x256xf32>
    %41 = vector.broadcast %cst_18 : f32 to vector<4x256xf32>
    %42 = arith.select %29, %40, %41 : vector<4x256xi1>, vector<4x256xf32>
    %cst_19 = arith.constant dense<0.000000e+00> : vector<4xf32>
    %43 = vector.multi_reduction <add>, %42, %cst_19 [1] : vector<4x256xf32> to vector<4xf32>
    %44 = vector.shape_cast %43 : vector<4xf32> to vector<4x1xf32>
    %45 = arith.addf %39, %44 : vector<4x1xf32>
    %46 = arith.addf %37, %45 : vector<4x1xf32>
    %c0_20 = arith.constant 0 : index
    %c0_21 = arith.constant 0 : index
    %47 = vector.load %arg7[%c0_20, %c0_21] : memref<4x1xf32, #tpu.memory_space<vmem>>, vector<4x1xf32>
    tpu.vector_store %arg7[%c0_20, %c0_21], %46 {strides = array<i32>} : memref<4x1xf32, #tpu.memory_space<vmem>>, vector<4x1xf32>,
    %c0_i32_22 = arith.constant 0 : i32
    %48 = arith.cmpi eq, %arg1, %c0_i32_22 : i32
    %49 = arith.extui %48 : i1 to i32
    %c0_i32_23 = arith.constant 0 : i32
    %50 = arith.cmpi ne, %49, %c0_i32_23 : i32
    scf.if %50 {
      %c0_24 = arith.constant 0 : index
      %c0_25 = arith.constant 0 : index
      %51 = vector.load %arg6[%c0_24, %c0_25] : memref<4x1xf32, #tpu.memory_space<vmem>>, vector<4x1xf32>
      %c0_26 = arith.constant 0 : index
      %c0_27 = arith.constant 0 : index
      %c0_28 = arith.constant 0 : index
      %52 = vector.load %arg4[%c0_26, %c0_27, %c0_28] : memref<1x4x1xf32, #tpu.memory_space<vmem>>, vector<1x4x1xf32>
      %53 = vector.shape_cast %52 : vector<1x4x1xf32> to vector<4x1xf32>
      %54 = vector.shape_cast %51 : vector<4x1xf32> to vector<1x4x1xf32>
      tpu.vector_store %arg4[%c0_26, %c0_27, %c0_28], %54 {strides = array<i32>} : memref<1x4x1xf32, #tpu.memory_space<vmem>>, vector<1x4x1xf32>,
      %c0_29 = arith.constant 0 : index
      %c0_30 = arith.constant 0 : index
      %55 = vector.load %arg7[%c0_29, %c0_30] : memref<4x1xf32, #tpu.memory_space<vmem>>, vector<4x1xf32>
      %c0_31 = arith.constant 0 : index
      %c0_32 = arith.constant 0 : index
      %c0_33 = arith.constant 0 : index
      %56 = vector.load %arg5[%c0_31, %c0_32, %c0_33] : memref<1x4x1xf32, #tpu.memory_space<vmem>>, vector<1x4x1xf32>
      %57 = vector.shape_cast %56 : vector<1x4x1xf32> to vector<4x1xf32>
      %58 = vector.shape_cast %55 : vector<4x1xf32> to vector<1x4x1xf32>
      tpu.vector_store %arg5[%c0_31, %c0_32, %c0_33], %58 {strides = array<i32>} : memref<1x4x1xf32, #tpu.memory_space<vmem>>, vector<1x4x1xf32>,
    } else {
    }
    return
  }
  func.func @transform_0(%arg0: i32, %arg1: i32) -> (i32, i32, i32) {
    %c0_i32 = arith.constant 0 : i32
    %c0_i32_0 = arith.constant 0 : i32
    return %arg0, %c0_i32, %arg1 : i32, i32, i32
  }
  func.func @transform_1(%arg0: i32, %arg1: i32) -> (i32, i32, i32) {
    %c0_i32 = arith.constant 0 : i32
    %c0_i32_0 = arith.constant 0 : i32
    return %arg0, %c0_i32, %arg1 : i32, i32, i32
  }
  func.func @transform_2(%arg0: i32, %arg1: i32) -> (i32, i32, i32) {
    %c0_i32 = arith.constant 0 : i32
    %c0_i32_0 = arith.constant 0 : i32
    %c0_i32_1 = arith.constant 0 : i32
    return %arg0, %c0_i32, %c0_i32_0 : i32, i32, i32
  }
  func.func @transform_3(%arg0: i32, %arg1: i32) -> (i32, i32, i32) {
    %c0_i32 = arith.constant 0 : i32
    %c0_i32_0 = arith.constant 0 : i32
    %c0_i32_1 = arith.constant 0 : i32
    return %arg0, %c0_i32, %c0_i32_0 : i32, i32, i32
  }
}

</mosaic_0001>

<bundles_post_ra>
// kernel: tpu_custom_call.1
= control target key start
LH: loop header
LB: loop body
LE: loop exit
PB: predicated region body
PF: predicated region fallthrough
CT: control target
= control target key end

     0   :  { %9 = vsyncpa [#allocation5], 0  ;;  %s950_s0 = inlined_call_operand.hbm [shape: f32[2,4,256], index: 0, kind: input, shape index: {}]   ;;  %s951_s1 = inlined_call_operand.hbm [shape: s32[2,1,256], index: 1, kind: input, shape index: {}]   ;;  %s952_s2 = inlined_call_operand.vmem [shape: f32[2,4,1], index: 2, kind: output, shape index: {0}]   ;;  %s953_s3 = inlined_call_operand.vmem [shape: f32[2,4,1], index: 3, kind: output, shape index: {1}]  }
   0x1   :  { %11 = vsyncpa [#allocation5 + $0x1], 0 }
   0x2   :  { %12 = vsyncpa [#allocation7], 0 }
   0x3   :  { %14 = vsyncpa [#allocation7 + $0x1], 0  ;;  %s762_s12 = smov 0   ;;  %s764_s13 = smov 0  }
   0x4   :  { %s766_s14 = smov 0   ;;  %s768_s15 = smov 0  }
   0x5   :  { %s770_s16 = smov 0   ;;  %s772_s17 = smov 0  }
   0x6 LB: > { %s533_s18 = sadd.s32 4294967295, %s736_s17   ;;  %s32_s19 = sadd.s32 1, %s732_s16  ;;  %s736_s17 = sphi %s772_s17, %s20_s17   ;;  %s732_s16 = sphi %s770_s16, %s967_s16   ;;  %s728_s15 = sphi %s768_s15, %s966_s15   ;;  %s724_s14 = sphi %s766_s14, %s965_s14   ;;  %s720_s13 = sphi %s764_s13, %s964_s13   ;;  %s716_s12 = sphi %s762_s12, %s963_s12  }
   0x7   : > { %p34_p0 = scmp.ge.s32.totalorder %s32_s19, 2  ;;  %s41_s20 = sadd.s32 1, %s724_s14 }
   0x8   : > { %p48_p1 = scmp.ne.s32.totalorder %s724_s14, %s720_s13  ;;  %p49_p2 = scmp.eq.s32.totalorder %s736_s17, 0 }
   0x9   : > { %s969_s19 = smov (%p34_p0, %s32_s19), 0  ;;  %p54_p4 = scmp.ne.s32.totalorder %s720_s13, %s716_s12 }
   0xa   : > { %p798_p3 = por %p49_p2, %p48_p1  ;;  %s36_s22 = ssub.s32 %s732_s16, %s969_s19 }
   0xb   : > { %p55_p5 = scmp.eq.s32.totalorder %s533_s18, 0  ;;  %p39_p6 = scmp.eq.s32.totalorder %s36_s22, 0 }
   0xc   : > { %p564_p8 = scmp.lt.s32.totalorder %s736_s17, 2  ;;  %s814_s25 = sand.u32 1, %s724_s14  }
   0xd   : > { %p805_p7 = por %p55_p5, %p54_p4  ;;  %s551_s26 = sshll.u32 %s732_s16, 7 }
   0xe   : > { %s811_s24 = scalar_select %p39_p6, %s724_s14, %s41_s20  }
   0xf   : > { %s956_s23 = scalar_select %p805_p7, 1, 0 }
  0x10   : > { %s537_s27 = sshll.u32 %s814_s25, 3  ;;  %s821_s30 = scalar_lea.hbm %s950_s0, %s551_s26 }
  0x11   : > { %s162_s4 = scalar_lea.vmem [#allocation4], %s537_s27  ;;  %p825_p9 = pnand %p564_p8, %p798_p3 }
  0x12   : > { %s172_s5 = sshll.u32 %s162_s4, 4  ;;  %s159_s7 = scalar_lea.sflag [#allocation5], %s814_s25  ;;  %s829_s5 = int_to_ptr.vmem [resolvable:$true] %s172_s5 }
  0x13   : > { %s622_s8 = scalar_lea.hbm %s821_s30, 128  ;;  %p624_p13 = pneg %p825_p9 }
  0x14   : > { %p623_p12 = scmp.ne.s32.totalorder %s821_s30, %s622_s8  ;;  %s627_s11 = scalar_lea.hbm %s950_s0, 256 }
  0x15   : > { %p628_p2 = scmp.lt.u32.totalorder %s821_s30, %s950_s0  ;;  %p629_p3 = scmp.lt.u32.totalorder %s627_s11, %s622_s8 }
  0x16   : > { %p625_p0 = pnand %p624_p13, %p623_p12  ;;  %p631_p5 = scmp.lt.u32.totalorder %s622_s8, %s821_s30 }
  0x17   : > { %p630_p4 = por %p629_p3, %p628_p2 }
  0x18   : > { %p626_p1 = pneg %p625_p0 }
  0x19   : > { %p632_p6 = por %p631_p5, %p630_p4 }
  0x1b   : > { %p633_p8 = pnand %p632_p6, %p626_p1 }
  0x1d   : > { %636 = shalt.err (!%p633_p8)
}
  0x1e   : > { %s637_s20 = scalar_lea.vmem %s829_s5, 128  ;;  %s738_s21 = smov [#allocation4]  }
  0x1f   : > { %p638_p12 = scmp.ne.s32.totalorder %s829_s5, %s637_s20  ;;  %s642_s22 = sshll.u32 %s738_s21, 4  ;;  %s643_s22 = int_to_ptr.vmem [resolvable:$false] %s642_s22 }
  0x20   : > { %s644_s26 = scalar_lea.vmem %s643_s22, 256  ;;  %p645_p11 = scmp.lt.s32.totalorder %s829_s5, %s643_s22 }
  0x21   : > { %p640_p0 = pnand %p638_p12, %p624_p13  ;;  %p646_p2 = scmp.lt.s32.totalorder %s644_s26, %s637_s20 }
  0x23   : > { %p641_p10 = pneg %p640_p0  ;;  %p647_p3 = por %p646_p2, %p645_p11 }
  0x25   : > { %p648_p4 = pnand %p647_p3, %p641_p10 }
  0x27   : > { %651 = shalt.err (!%p648_p4)
}
  0x28   : > { %560 = dma.hbm_to_vmem [thread:$0]  (!%p825_p9), %s821_s30, 128, %s829_s5, %s159_s7  }
  0x29   : > { %p958_p1 = scmp.lt.s32.totalorder %s736_s17, 3  ;;  %p959_p5 = scmp.ge.s32.totalorder %s736_s17, 1 }
  0x2a   : > { %s540_s28 = sshll.u32 %s814_s25, 1  ;;  %s552_s29 = sshll.u32 %s732_s16, 5 }
  0x2b   : > { %p863_p6 = pnand %p959_p5, %p958_p1  ;;  %s872_s9 = scalar_lea.hbm %s951_s1, %s552_s29 }
  0x2c   : > { %s183_s10 = scalar_lea.vmem [#allocation6], %s540_s28  ;;  %s180_s30 = scalar_lea.sflag [#allocation7], %s814_s25 }
  0x2d   : > { %s960_s27 = scalar_select %p863_p6, 1, 0 }
  0x2e   : > { %s193_s11 = sshll.u32 %s183_s10, 4  ;;  %s652_s5 = scalar_lea.hbm %s872_s9, 32  ;;  %s194_s11 = int_to_ptr.vmem [resolvable:$true] %s193_s11 }
  0x2f   : > { %p653_p10 = scmp.ne.s32.totalorder %s872_s9, %s652_s5  ;;  %s657_s18 = scalar_lea.hbm %s951_s1, 64 }
  0x30   : > { %p658_p12 = scmp.lt.u32.totalorder %s872_s9, %s951_s1  ;;  %p659_p0 = scmp.lt.u32.totalorder %s657_s18, %s652_s5 }
  0x31   : > { %p655_p11 = pnand %p653_p10, %p624_p13  ;;  %p661_p3 = scmp.lt.u32.totalorder %s652_s5, %s872_s9 }
  0x32   : > { %p660_p2 = por %p659_p0, %p658_p12 }
  0x33   : > { %p656_p8 = pneg %p655_p11 }
  0x34   : > { %p662_p4 = por %p661_p3, %p660_p2 }
  0x36   : > { %p663_p1 = pnand %p662_p4, %p656_p8 }
  0x38   : > { %666 = shalt.err (!%p663_p1)
}
  0x39   : > { %s667_s25 = scalar_lea.vmem %s194_s11, 32  ;;  %s739_s22 = smov [#allocation6]  }
  0x3a   : > { %p668_p5 = scmp.ne.s32.totalorder %s194_s11, %s667_s25  ;;  %s672_s26 = sshll.u32 %s739_s22, 4  ;;  %s673_s26 = int_to_ptr.vmem [resolvable:$false] %s672_s26 }
  0x3b   : > { %s674_s28 = scalar_lea.vmem %s673_s26, 64  ;;  %p675_p7 = scmp.lt.s32.totalorder %s194_s11, %s673_s26 }
  0x3c   : > { %p670_p10 = pnand %p668_p5, %p624_p13  ;;  %p676_p6 = scmp.lt.s32.totalorder %s674_s28, %s667_s25 }
  0x3e   : > { %p671_p11 = pneg %p670_p10  ;;  %p677_p0 = por %p676_p6, %p675_p7 }
  0x40   : > { %p678_p12 = pnand %p677_p0, %p671_p11 }
  0x42   : > { %681 = shalt.err (!%p678_p12)
}
  0x43   : > { %563 = dma.hbm_to_vmem [thread:$0]  (!%p825_p9), %s872_s9, 32, %s194_s11, %s180_s30  }
  0x44   : > { %p961_p8 = scmp.ne.s32.totalorder %s960_s27, 0 }
  0x45   : > { %s204_s29 = sand.u32 (!%p961_p8), 1, %s720_s13   ;;  %p962_p13 = scmp.ne.s32.totalorder (!%p961_p8), %s956_s23, 0 }
  0x46   : > { %202 = sbr.rel (%p961_p8) target bundleno = 324 (0x144), region = 28  ;;  %s544_s4 = sshll.u32 (!%p961_p8), %s204_s29, 3 }
  0x47   : > { %s205_s8 = scalar_lea.sflag (!%p961_p8), [#allocation5], %s204_s29  ;;  %s208_s10 = scalar_lea.vmem (!%p961_p8), [#allocation4], %s544_s4 }
  0x4d   : > { %707 = dma.done.wait (%p962_p13), %s205_s8, 128  }
  0x4e   : > { %709 = vsyncadd (%p962_p13), %s205_s8, 4294967168  ;;  %s545_s5 = sshll.u32 %s204_s29, 1  ;;  %s214_s7 = scalar_lea.sflag [#allocation7], %s204_s29 }
  0x4f   : > { %s901_s6 = scalar_lea.vmem [#allocation6], %s545_s5 }
  0x50   : > { %711 = dma.done.wait (%p962_p13), %s214_s7, 32  }
  0x51   : > { %713 = vsyncadd (%p962_p13), %s214_s7, 4294967264  ;;  %vm275_vm0 = vcmask 1043456   ;;  %v265_v0 = vld [vmem:[%s208_s10] sm:$0xff]  ;;  %v267_v35 = vlaneseq  ;;  %v740_v36 = vmov 1966171168   ;;  %v741_v52 = vmov 0.0  }
  0x52   : > { %v273_v1 = vcombine.high %v265_v0, %v265_v0  ;;  %v276_v2 = vsel %vm275_vm0, %v265_v0, -inf  ;;  %v326_v37 = vunpack.c.l.s4 %v740_v36  ;;  %v266_v47 = vld [vmem:[%s901_s6] sm:$0x3]  ;;  %vm262_vm4 = vcmask 3072   ;;  %p250_p7 = scmp.lt.s32.totalorder %s728_s15, 1 }
  0x53   : > { %v277_v3 = vrot.slane %v276_v2, 4  ;;  %v268_v41 = vshrl.u32 %v267_v35, 7  ;;  %vm269_vm1 = vcmp.ne.s32.totalorder %v266_v47, 4294967295  ;;  %264 = vst.msk [vmem:[#allocation3] sm:$0xf] %vm262_vm4, %v741_v52 }
  0x54   : > { %v283_v4 = vsel %vm275_vm0, %v273_v1, -inf  ;;  %v327_v44 = vunpack.c.0.s8 %v326_v37  ;;  %v548_v53 = vsel %vm269_vm1, 1.0, %v741_v52  ;;  %263 = vst.msk [vmem:[#allocation2] sm:$0xf] %vm262_vm4, %v741_v52  ;;  %s971_s15 = smov (!%p250_p7, %s728_s15), 1 }
  0x55   : > { %v278_v5 = vmax.f32 %v276_v2, %v277_v3  ;;  %v284_v6 = vrot.slane %v283_v4, 4  ;;  %v344_v55 = vsub.s32 0, %v268_v41  ;;  %v348_v56 = vsub.s32 1, %v268_v41  ;;  %s546_s23 = sshll.u32 %s971_s15, 2 }
  0x56   : > { %v330_v49 = vsub.s32 %v327_v44, %v268_v41  ;;  %s253_s11 = scalar_lea.vmem %s952_s2, %s546_s23  ;;  %s257_s18 = scalar_lea.vmem %s953_s3, %s546_s23 }
  0x57   : > { %v279_v7 = vrot.slane %v278_v5, 2  ;;  %v285_v8 = vmax.f32 %v283_v4, %v284_v6  ;;  %v356_v58 = vrot.slane %v266_v47, %v344_v55  ;;  %v360_v59 = vrot.slane %v266_v47, %v348_v56 }
  0x59   : > { %v280_v9 = vmax.f32 %v278_v5, %v279_v7  ;;  %v286_v10 = vrot.slane %v285_v8, 2  ;;  %vm361_vm2 = vcmp.eq.s32.totalorder %v356_v58, %v268_v41  ;;  %vm362_vm3 = vcmp.eq.s32.totalorder %v360_v59, %v268_v41 }
  0x5a   : > { %v384_v1 = vsel %vm362_vm3, 1.0, %v741_v52 }
  0x5b   : > { %v281_v11 = vrot.slane %v280_v9, 1  ;;  %v287_v12 = vmax.f32 %v285_v8, %v286_v10  ;;  %v386_v8 = vsel %vm275_vm0, %v384_v1, 0.0 }
  0x5d   : > { %v282_v13 = vmax.f32 %v280_v9, %v281_v11  ;;  %v288_v14 = vrot.slane %v287_v12, 1 }
  0x5f   : > { %v289_v15 = vmax.f32 %v287_v12, %v288_v14  ;;  %v363_v14 = vld [vmem:[#allocation2] sm:$0xf] }
  0x61   : > { %v292_v16 = vcombine.low %v282_v13, %v289_v15 }
  0x63   : > { %v294_v17 = vsub.f32 %v265_v0, %v292_v16  ;;  %v383_v0 = vsel %vm361_vm2, 1.0, %v741_v52 }
  0x64   : > { %v385_v7 = vsel %vm275_vm0, %v383_v0, 0.0 }
  0x65   : > { %v295_v18 = vmul.f32 1.442695, %v294_v17  ;;  %v387_v13 = vadd.f32 %v386_v8, %v385_v7 }
  0x67   : > { %616 = vpow2.f32 %v295_v18 }
  0x71   : > { %v617_v19 = vpop.eup %616 }
  0x72   : > { %v298_v20 = vcombine.high %v617_v19, %v617_v19  ;;  %v300_v21 = vsel %vm275_vm0, %v617_v19, 0.0 }
  0x73   : > { %v301_v22 = vrot.slane %v300_v21, 4 }
  0x74   : > { %v307_v23 = vsel %vm275_vm0, %v298_v20, 0.0 }
  0x75   : > { %v302_v24 = vadd.f32 %v301_v22, %v300_v21  ;;  %v308_v25 = vrot.slane %v307_v23, 4 }
  0x77   : > { %v303_v26 = vrot.slane %v302_v24, 2  ;;  %v309_v27 = vadd.f32 %v308_v25, %v307_v23 }
  0x79   : > { %v304_v28 = vadd.f32 %v303_v26, %v302_v24  ;;  %v310_v29 = vrot.slane %v309_v27, 2 }
  0x7b   : > { %v305_v30 = vrot.slane %v304_v28, 1  ;;  %v311_v31 = vadd.f32 %v310_v29, %v309_v27 }
  0x7d   : > { %v306_v32 = vadd.f32 %v305_v30, %v304_v28  ;;  %v312_v33 = vrot.slane %v311_v31, 1 }
  0x7f   : > { %v313_v34 = vadd.f32 %v312_v33, %v311_v31  ;;  %618 = vrcp.f32 %v306_v32 }
  0x81   : > { %620 = vrcp.f32 %v313_v34 }
  0x89   : > { %v619_v38 = vpop.eup %618 }
  0x8a   : > { %v316_v39 = vmul.f32 %v619_v38, %v306_v32 }
  0x8b   : > { %v621_v40 = vpop.eup %620 }
  0x8c   : > { %v317_v42 = vmul.f32 %v621_v40, %v313_v34  ;;  %v318_v43 = vsub.f32 2.0, %v316_v39 }
  0x8e   : > { %v319_v45 = vsub.f32 2.0, %v317_v42  ;;  %v320_v46 = vmul.f32 %v619_v38, %v318_v43 }
  0x90   : > { %v321_v48 = vmul.f32 %v621_v40, %v319_v45 }
  0x92   : > { %v324_v50 = vcombine.low %v320_v46, %v321_v48 }
  0x94   : > { %v331_v51 = vrot.slane %v324_v50, %v330_v49 }
  0x96   : > { %v338_v54 = vrot.slane %v331_v51, %v330_v49 }
  0x98   : > { %v340_v57 = vmul.f32 %v548_v53, %v338_v54 }
  0x9a   : > { %v345_v60 = vrot.slane %v340_v57, %v344_v55  ;;  %v349_v61 = vrot.slane %v340_v57, %v348_v56 }
  0x9c   : > { %v350_v62 = vcombine.low %v345_v60, %v349_v61 }
  0x9e   : > { %v352_v63 = vmul.f32 %v617_v19, %v350_v62  ;;  %v377_v19 = vld [vmem:[#allocation3] sm:$0xf] }
  0xa0   : > { %v365_v2 = vcombine.high %v352_v63, %v352_v63  ;;  %v378_v3 = vsel %vm275_vm0, %v352_v63, 0.0  ;;  %v367_v4 = vsel %vm361_vm2, %v352_v63, 0.0 }
  0xa1   : > { %v369_v5 = vsel %vm275_vm0, %v367_v4, 0.0 }
  0xa2   : > { %v379_v6 = vsel %vm275_vm0, %v365_v2, 0.0  ;;  %v368_v9 = vsel %vm362_vm3, %v365_v2, 0.0 }
  0xa3   : > { %v380_v10 = vadd.f32 %v379_v6, %v378_v3  ;;  %v370_v11 = vsel %vm275_vm0, %v368_v9, 0.0 }
  0xa4   : > { %v371_v12 = vadd.f32 %v370_v11, %v369_v5 }
  0xa5   : > { %381 = vadd.xlane.f32.xlu0 %v380_v10 }
  0xa6   : > { %372 = vadd.xlane.f32.xlu1 %v371_v12 }
  0xa9   : > { %388 = vadd.xlane.f32.xlu0 %v387_v13 }
 0x132   : > { %v382_v15 = vpop.xlane.xlu0 %381 }
 0x133   : > { %v373_v16 = vpop.xlane.xlu1 %372 }
 0x134   : > { %v374_v17 = vadd.f32 %v373_v16, %v363_v14 }
 0x136   : > { %v389_v18 = vpop.xlane.xlu0 %388  ;;  %376 = vst.msk [vmem:[#allocation2] sm:$0xf] %vm262_vm4, %v374_v17 }
 0x137   : > { %v390_v20 = vadd.f32 %v389_v18, %v382_v15 }
 0x139   : > { %v391_v21 = vadd.f32 %v390_v20, %v377_v19 }
 0x13b   : > { %392 = vst.msk [vmem:[#allocation3] sm:$0xf] %vm262_vm4, %v391_v21 }
 0x13d   : > { %v396_v22 = vld [vmem:[#allocation2] sm:$0xf] }
 0x13e   : > { %397 = vst.msk [vmem:[%s253_s11] sm:$0xf] %vm262_vm4, %v396_v22 }
 0x142   : > { %v398_v23 = vld [vmem:[#allocation3] sm:$0xf] }
 0x143   : > { %399 = vst.msk [vmem:[%s257_s18] sm:$0xf] %vm262_vm4, %v398_v23 }
 0x144 PF: > { %s20_s17 = sadd.s32 1, %s736_s17   ;;  %s963_s12 = smov %s720_s13 }
 0x145   : > { %p17_p9 = scmp.ge.s32.totalorder %s20_s17, 4   ;;  %s964_s13 = smov %s724_s14 }
 0x146   : > { %s965_s14 = smov %s811_s24  ;;  %s966_s15 = smov %s732_s16 }
 0x147   : > { %s967_s16 = smov %s969_s19  ;;  %19 = sbr.rel (!%p17_p9) target bundleno = 6 (0x6), region = 101 }
 0x14e   :  { %433 = vsyncpa [#allocation5], 1 }
 0x14f   :  { %435 = vsyncpa [#allocation5 + $0x1], 1 }
 0x150   :  { %436 = vsyncpa [#allocation7], 1 }
 0x151   :  { %438 = vsyncpa [#allocation7 + $0x1], 1 }

</bundles_post_ra>
